<compile_context>
chip_gen: v6e
topology: v6e:2x2x1
jax: 0.10.0
libtpu: 0.0.40
codegen_flags: <defaults>
</compile_context>

<pallas_src>
import functools

import jax
import jax.numpy as jnp
from jax.experimental import pallas as pl
from jax.experimental.pallas import tpu as pltpu

D_IN, D_H1, D_H2, D_OUT = 2, 10, 5, 1

LANES = 128          # vreg lane width
TILE_SUBLANES = 16   # batch sublane-rows per grid step -> 16 * 128 = 2048 rows/step


def actor_kernel(x_ref, w1_ref, b1_ref, w2_ref, b2_ref, w3_ref, b3_ref, o_ref):
    """One batch tile.  x_ref: (D_IN, TBS, 128); o_ref: (D_OUT, TBS, 128).

    Feature dims are tiny, so each layer is an unrolled scalar-broadcast FMA chain
    on the VPU over full (sublane, lane) batch slabs instead of an MXU matmul.
    Weights / biases are flat f32 tables in SMEM.
    """
    x = x_ref[...]                       # (2, TBS, 128) f32, batch on sublanes+lanes
    xr = [x[k] for k in range(D_IN)]     # per-input-feature (TBS, 128) slabs

    # fc1: 2 -> 10, + ReLU
    h1 = []
    for j in range(D_H1):
        s = b1_ref[j] + w1_ref[j * D_IN] * xr[0]
        for k in range(1, D_IN):
            s = s + w1_ref[j * D_IN + k] * xr[k]
        h1.append(jnp.maximum(s, 0.0))

    # fc2: 10 -> 5, + ReLU
    h2 = []
    for j in range(D_H2):
        s = b2_ref[j] + w2_ref[j * D_H1] * h1[0]
        for k in range(1, D_H1):
            s = s + w2_ref[j * D_H1 + k] * h1[k]
        h2.append(jnp.maximum(s, 0.0))

    # fc3: 5 -> 1, then clamp to [-1, 1]
    # (== torch.maximum(torch.minimum(x, ones), -ones))
    y = b3_ref[0] + w3_ref[0] * h2[0]
    for k in range(1, D_H2):
        y = y + w3_ref[k] * h2[k]
    y = jnp.maximum(jnp.minimum(y, 1.0), -1.0)

    o_ref[...] = y[None, :, :]           # (1, TBS, 128): unmasked, lane-dense store


@functools.partial(jax.jit, static_argnames=("tile_sublanes",))
def actor_forward(x, params, *, tile_sublanes=TILE_SUBLANES):
    """x: [B, 2] float32 -> [B, 1] float32 (matches PyTorch Actor.forward)."""
    w1, b1, w2, b2, w3, b3 = params
    B = x.shape[0]

    tile_rows = tile_sublanes * LANES
    num_tiles = max(1, -(-B // tile_rows))      # cdiv
    Bp = num_tiles * tile_rows
    R = Bp // LANES                             # total sublane-rows after padding

    # [B, 2] -> [2, Bp] (batch on the fast axes) -> [2, R, 128]
    xt = jnp.pad(x.T, ((0, 0), (0, Bp - B)))
    x3 = xt.reshape(D_IN, R, LANES)

    smem = pl.BlockSpec(memory_space=pltpu.MemorySpace.SMEM)

    out3 = pl.pallas_call(
        actor_kernel,
        out_shape=jax.ShapeDtypeStruct((D_OUT, R, LANES), jnp.float32),
        grid=(num_tiles,),
        in_specs=[
            pl.BlockSpec((D_IN, tile_sublanes, LANES), lambda i: (0, i, 0)),
            smem, smem, smem, smem, smem, smem,   # flat weight / bias tables
        ],
        out_specs=pl.BlockSpec((D_OUT, tile_sublanes, LANES), lambda i: (0, i, 0)),
        compiler_params=pltpu.CompilerParams(
            dimension_semantics=("parallel",),    # shard batch tiles across v7x TCs
        ),
    )(
        x3,
        w1.reshape(-1), b1.reshape(-1),
        w2.reshape(-1), b2.reshape(-1),
        w3.reshape(-1), b3.reshape(-1),
    )

    # [1, R, 128] -> [1, Bp] -> strip padding -> [B, 1]
    return out3.reshape(D_OUT, Bp)[:, :B].T


def init_params(key):
    """Deterministic init mimicking nn.Linear's U(-1/sqrt(fan_in), 1/sqrt(fan_in)).

    Weights use the PyTorch convention: [out_features, in_features]; biases are 1-D.
    """
    dims = [(D_IN, D_H1), (D_H1, D_H2), (D_H2, D_OUT)]
    params = []
    for i, (fan_in, fan_out) in enumerate(dims):
        kw, kb = jax.random.split(jax.random.fold_in(key, i))
        bound = 1.0 / jnp.sqrt(float(fan_in))
        w = jax.random.uniform(kw, (fan_out, fan_in), jnp.float32, -bound, bound)
        b = jax.random.uniform(kb, (fan_out,), jnp.float32, -bound, bound)
        params.extend([w, b])
    return tuple(params)


def _reference(x, params):
    w1, b1, w2, b2, w3, b3 = params
    h1 = jnp.maximum(x @ w1.T + b1, 0.0)
    h2 = jnp.maximum(h1 @ w2.T + b2, 0.0)
    return jnp.clip(h2 @ w3.T + b3, -1.0, 1.0)


if __name__ == "__main__":
    key = jax.random.PRNGKey(0)
    params = init_params(key)

    # Small batch (matches the toy module) plus a larger, non-multiple batch that
    # exercises the multi-tile grid and the padding path.
    for batch in (8, 5000):
        x = jax.random.normal(
            jax.random.fold_in(key, 100 + batch), (batch, D_IN), jnp.float32
        )
        out = actor_forward(x, params)
        jax.block_until_ready(out)

        ref = _reference(x, params)
        assert out.shape == (batch, D_OUT), (out.shape, batch)
        assert jnp.allclose(out, ref, atol=1e-5), f"mismatch vs reference (batch={batch})"

    print("KERNEL_OK")
</pallas_src>

<mosaic_0001>
module attributes {stable_mosaic.version = 11 : i64} {
  func.func @actor_kernel(%arg0: i32, %arg1: memref<2x16x128xf32, #tpu.memory_space<vmem>>, %arg2: memref<20xf32, #tpu.memory_space<smem>>, %arg3: memref<10xf32, #tpu.memory_space<smem>>, %arg4: memref<50xf32, #tpu.memory_space<smem>>, %arg5: memref<5xf32, #tpu.memory_space<smem>>, %arg6: memref<5xf32, #tpu.memory_space<smem>>, %arg7: memref<1xf32, #tpu.memory_space<smem>>, %arg8: memref<1x16x128xf32, #tpu.memory_space<vmem>>) attributes {dimension_semantics = [#tpu.dimension_semantics<parallel>], iteration_bounds = array<i64: 1>, scalar_prefetch = 0 : i64, scratch_operands = 0 : i64, tpu.core_type = #tpu.core_type<tc>, window_params = [{transform_indices = @transform_0, window_bounds = array<i64: 2, 16, 128>}, {transform_indices = @transform_1, window_bounds = array<i64: 20>}, {transform_indices = @transform_2, window_bounds = array<i64: 10>}, {transform_indices = @transform_3, window_bounds = array<i64: 50>}, {transform_indices = @transform_4, window_bounds = array<i64: 5>}, {transform_indices = @transform_5, window_bounds = array<i64: 5>}, {transform_indices = @transform_6, window_bounds = array<i64: 1>}, {transform_indices = @transform_7, window_bounds = array<i64: 1, 16, 128>}]} {
    %c0 = arith.constant 0 : index
    %c0_0 = arith.constant 0 : index
    %c0_1 = arith.constant 0 : index
    %0 = vector.load %arg1[%c0, %c0_0, %c0_1] : memref<2x16x128xf32, #tpu.memory_space<vmem>>, vector<2x16x128xf32>
    %1 = vector.extract_strided_slice %0 {offsets = [0, 0, 0], sizes = [1, 16, 128], strides = [1, 1, 1]} : vector<2x16x128xf32> to vector<1x16x128xf32>
    %2 = vector.shape_cast %1 : vector<1x16x128xf32> to vector<16x128xf32>
    %3 = vector.extract_strided_slice %0 {offsets = [1, 0, 0], sizes = [1, 16, 128], strides = [1, 1, 1]} : vector<2x16x128xf32> to vector<1x16x128xf32>
    %4 = vector.shape_cast %3 : vector<1x16x128xf32> to vector<16x128xf32>
    %c0_2 = arith.constant 0 : index
    %5 = memref.load %arg3[%c0_2] : memref<10xf32, #tpu.memory_space<smem>>
    %c0_3 = arith.constant 0 : index
    %6 = memref.load %arg2[%c0_3] : memref<20xf32, #tpu.memory_space<smem>>
    %7 = vector.broadcast %6 : f32 to vector<16x128xf32>
    %8 = arith.mulf %7, %2 : vector<16x128xf32>
    %9 = vector.broadcast %5 : f32 to vector<16x128xf32>
    %10 = arith.addf %9, %8 : vector<16x128xf32>
    %c1 = arith.constant 1 : index
    %11 = memref.load %arg2[%c1] : memref<20xf32, #tpu.memory_space<smem>>
    %12 = vector.broadcast %11 : f32 to vector<16x128xf32>
    %13 = arith.mulf %12, %4 : vector<16x128xf32>
    %14 = arith.addf %10, %13 : vector<16x128xf32>
    %cst = arith.constant 0.000000e+00 : f32
    %15 = vector.broadcast %cst : f32 to vector<16x128xf32>
    %16 = arith.maximumf %14, %15 : vector<16x128xf32>
    %c1_4 = arith.constant 1 : index
    %17 = memref.load %arg3[%c1_4] : memref<10xf32, #tpu.memory_space<smem>>
    %c2 = arith.constant 2 : index
    %18 = memref.load %arg2[%c2] : memref<20xf32, #tpu.memory_space<smem>>
    %19 = vector.broadcast %18 : f32 to vector<16x128xf32>
    %20 = arith.mulf %19, %2 : vector<16x128xf32>
    %21 = vector.broadcast %17 : f32 to vector<16x128xf32>
    %22 = arith.addf %21, %20 : vector<16x128xf32>
    %c3 = arith.constant 3 : index
    %23 = memref.load %arg2[%c3] : memref<20xf32, #tpu.memory_space<smem>>
    %24 = vector.broadcast %23 : f32 to vector<16x128xf32>
    %25 = arith.mulf %24, %4 : vector<16x128xf32>
    %26 = arith.addf %22, %25 : vector<16x128xf32>
    %cst_5 = arith.constant 0.000000e+00 : f32
    %27 = vector.broadcast %cst_5 : f32 to vector<16x128xf32>
    %28 = arith.maximumf %26, %27 : vector<16x128xf32>
    %c2_6 = arith.constant 2 : index
    %29 = memref.load %arg3[%c2_6] : memref<10xf32, #tpu.memory_space<smem>>
    %c4 = arith.constant 4 : index
    %30 = memref.load %arg2[%c4] : memref<20xf32, #tpu.memory_space<smem>>
    %31 = vector.broadcast %30 : f32 to vector<16x128xf32>
    %32 = arith.mulf %31, %2 : vector<16x128xf32>
    %33 = vector.broadcast %29 : f32 to vector<16x128xf32>
    %34 = arith.addf %33, %32 : vector<16x128xf32>
    %c5 = arith.constant 5 : index
    %35 = memref.load %arg2[%c5] : memref<20xf32, #tpu.memory_space<smem>>
    %36 = vector.broadcast %35 : f32 to vector<16x128xf32>
    %37 = arith.mulf %36, %4 : vector<16x128xf32>
    %38 = arith.addf %34, %37 : vector<16x128xf32>
    %cst_7 = arith.constant 0.000000e+00 : f32
    %39 = vector.broadcast %cst_7 : f32 to vector<16x128xf32>
    %40 = arith.maximumf %38, %39 : vector<16x128xf32>
    %c3_8 = arith.constant 3 : index
    %41 = memref.load %arg3[%c3_8] : memref<10xf32, #tpu.memory_space<smem>>
    %c6 = arith.constant 6 : index
    %42 = memref.load %arg2[%c6] : memref<20xf32, #tpu.memory_space<smem>>
    %43 = vector.broadcast %42 : f32 to vector<16x128xf32>
    %44 = arith.mulf %43, %2 : vector<16x128xf32>
    %45 = vector.broadcast %41 : f32 to vector<16x128xf32>
    %46 = arith.addf %45, %44 : vector<16x128xf32>
    %c7 = arith.constant 7 : index
    %47 = memref.load %arg2[%c7] : memref<20xf32, #tpu.memory_space<smem>>
    %48 = vector.broadcast %47 : f32 to vector<16x128xf32>
    %49 = arith.mulf %48, %4 : vector<16x128xf32>
    %50 = arith.addf %46, %49 : vector<16x128xf32>
    %cst_9 = arith.constant 0.000000e+00 : f32
    %51 = vector.broadcast %cst_9 : f32 to vector<16x128xf32>
    %52 = arith.maximumf %50, %51 : vector<16x128xf32>
    %c4_10 = arith.constant 4 : index
    %53 = memref.load %arg3[%c4_10] : memref<10xf32, #tpu.memory_space<smem>>
    %c8 = arith.constant 8 : index
    %54 = memref.load %arg2[%c8] : memref<20xf32, #tpu.memory_space<smem>>
    %55 = vector.broadcast %54 : f32 to vector<16x128xf32>
    %56 = arith.mulf %55, %2 : vector<16x128xf32>
    %57 = vector.broadcast %53 : f32 to vector<16x128xf32>
    %58 = arith.addf %57, %56 : vector<16x128xf32>
    %c9 = arith.constant 9 : index
    %59 = memref.load %arg2[%c9] : memref<20xf32, #tpu.memory_space<smem>>
    %60 = vector.broadcast %59 : f32 to vector<16x128xf32>
    %61 = arith.mulf %60, %4 : vector<16x128xf32>
    %62 = arith.addf %58, %61 : vector<16x128xf32>
    %cst_11 = arith.constant 0.000000e+00 : f32
    %63 = vector.broadcast %cst_11 : f32 to vector<16x128xf32>
    %64 = arith.maximumf %62, %63 : vector<16x128xf32>
    %c5_12 = arith.constant 5 : index
    %65 = memref.load %arg3[%c5_12] : memref<10xf32, #tpu.memory_space<smem>>
    %c10 = arith.constant 10 : index
    %66 = memref.load %arg2[%c10] : memref<20xf32, #tpu.memory_space<smem>>
    %67 = vector.broadcast %66 : f32 to vector<16x128xf32>
    %68 = arith.mulf %67, %2 : vector<16x128xf32>
    %69 = vector.broadcast %65 : f32 to vector<16x128xf32>
    %70 = arith.addf %69, %68 : vector<16x128xf32>
    %c11 = arith.constant 11 : index
    %71 = memref.load %arg2[%c11] : memref<20xf32, #tpu.memory_space<smem>>
    %72 = vector.broadcast %71 : f32 to vector<16x128xf32>
    %73 = arith.mulf %72, %4 : vector<16x128xf32>
    %74 = arith.addf %70, %73 : vector<16x128xf32>
    %cst_13 = arith.constant 0.000000e+00 : f32
    %75 = vector.broadcast %cst_13 : f32 to vector<16x128xf32>
    %76 = arith.maximumf %74, %75 : vector<16x128xf32>
    %c6_14 = arith.constant 6 : index
    %77 = memref.load %arg3[%c6_14] : memref<10xf32, #tpu.memory_space<smem>>
    %c12 = arith.constant 12 : index
    %78 = memref.load %arg2[%c12] : memref<20xf32, #tpu.memory_space<smem>>
    %79 = vector.broadcast %78 : f32 to vector<16x128xf32>
    %80 = arith.mulf %79, %2 : vector<16x128xf32>
    %81 = vector.broadcast %77 : f32 to vector<16x128xf32>
    %82 = arith.addf %81, %80 : vector<16x128xf32>
    %c13 = arith.constant 13 : index
    %83 = memref.load %arg2[%c13] : memref<20xf32, #tpu.memory_space<smem>>
    %84 = vector.broadcast %83 : f32 to vector<16x128xf32>
    %85 = arith.mulf %84, %4 : vector<16x128xf32>
    %86 = arith.addf %82, %85 : vector<16x128xf32>
    %cst_15 = arith.constant 0.000000e+00 : f32
    %87 = vector.broadcast %cst_15 : f32 to vector<16x128xf32>
    %88 = arith.maximumf %86, %87 : vector<16x128xf32>
    %c7_16 = arith.constant 7 : index
    %89 = memref.load %arg3[%c7_16] : memref<10xf32, #tpu.memory_space<smem>>
    %c14 = arith.constant 14 : index
    %90 = memref.load %arg2[%c14] : memref<20xf32, #tpu.memory_space<smem>>
    %91 = vector.broadcast %90 : f32 to vector<16x128xf32>
    %92 = arith.mulf %91, %2 : vector<16x128xf32>
    %93 = vector.broadcast %89 : f32 to vector<16x128xf32>
    %94 = arith.addf %93, %92 : vector<16x128xf32>
    %c15 = arith.constant 15 : index
    %95 = memref.load %arg2[%c15] : memref<20xf32, #tpu.memory_space<smem>>
    %96 = vector.broadcast %95 : f32 to vector<16x128xf32>
    %97 = arith.mulf %96, %4 : vector<16x128xf32>
    %98 = arith.addf %94, %97 : vector<16x128xf32>
    %cst_17 = arith.constant 0.000000e+00 : f32
    %99 = vector.broadcast %cst_17 : f32 to vector<16x128xf32>
    %100 = arith.maximumf %98, %99 : vector<16x128xf32>
    %c8_18 = arith.constant 8 : index
    %101 = memref.load %arg3[%c8_18] : memref<10xf32, #tpu.memory_space<smem>>
    %c16 = arith.constant 16 : index
    %102 = memref.load %arg2[%c16] : memref<20xf32, #tpu.memory_space<smem>>
    %103 = vector.broadcast %102 : f32 to vector<16x128xf32>
    %104 = arith.mulf %103, %2 : vector<16x128xf32>
    %105 = vector.broadcast %101 : f32 to vector<16x128xf32>
    %106 = arith.addf %105, %104 : vector<16x128xf32>
    %c17 = arith.constant 17 : index
    %107 = memref.load %arg2[%c17] : memref<20xf32, #tpu.memory_space<smem>>
    %108 = vector.broadcast %107 : f32 to vector<16x128xf32>
    %109 = arith.mulf %108, %4 : vector<16x128xf32>
    %110 = arith.addf %106, %109 : vector<16x128xf32>
    %cst_19 = arith.constant 0.000000e+00 : f32
    %111 = vector.broadcast %cst_19 : f32 to vector<16x128xf32>
    %112 = arith.maximumf %110, %111 : vector<16x128xf32>
    %c9_20 = arith.constant 9 : index
    %113 = memref.load %arg3[%c9_20] : memref<10xf32, #tpu.memory_space<smem>>
    %c18 = arith.constant 18 : index
    %114 = memref.load %arg2[%c18] : memref<20xf32, #tpu.memory_space<smem>>
    %115 = vector.broadcast %114 : f32 to vector<16x128xf32>
    %116 = arith.mulf %115, %2 : vector<16x128xf32>
    %117 = vector.broadcast %113 : f32 to vector<16x128xf32>
    %118 = arith.addf %117, %116 : vector<16x128xf32>
    %c19 = arith.constant 19 : index
    %119 = memref.load %arg2[%c19] : memref<20xf32, #tpu.memory_space<smem>>
    %120 = vector.broadcast %119 : f32 to vector<16x128xf32>
    %121 = arith.mulf %120, %4 : vector<16x128xf32>
    %122 = arith.addf %118, %121 : vector<16x128xf32>
    %cst_21 = arith.constant 0.000000e+00 : f32
    %123 = vector.broadcast %cst_21 : f32 to vector<16x128xf32>
    %124 = arith.maximumf %122, %123 : vector<16x128xf32>
    %c0_22 = arith.constant 0 : index
    %125 = memref.load %arg5[%c0_22] : memref<5xf32, #tpu.memory_space<smem>>
    %c0_23 = arith.constant 0 : index
    %126 = memref.load %arg4[%c0_23] : memref<50xf32, #tpu.memory_space<smem>>
    %127 = vector.broadcast %126 : f32 to vector<16x128xf32>
    %128 = arith.mulf %127, %16 : vector<16x128xf32>
    %129 = vector.broadcast %125 : f32 to vector<16x128xf32>
    %130 = arith.addf %129, %128 : vector<16x128xf32>
    %c1_24 = arith.constant 1 : index
    %131 = memref.load %arg4[%c1_24] : memref<50xf32, #tpu.memory_space<smem>>
    %132 = vector.broadcast %131 : f32 to vector<16x128xf32>
    %133 = arith.mulf %132, %28 : vector<16x128xf32>
    %134 = arith.addf %130, %133 : vector<16x128xf32>
    %c2_25 = arith.constant 2 : index
    %135 = memref.load %arg4[%c2_25] : memref<50xf32, #tpu.memory_space<smem>>
    %136 = vector.broadcast %135 : f32 to vector<16x128xf32>
    %137 = arith.mulf %136, %40 : vector<16x128xf32>
    %138 = arith.addf %134, %137 : vector<16x128xf32>
    %c3_26 = arith.constant 3 : index
    %139 = memref.load %arg4[%c3_26] : memref<50xf32, #tpu.memory_space<smem>>
    %140 = vector.broadcast %139 : f32 to vector<16x128xf32>
    %141 = arith.mulf %140, %52 : vector<16x128xf32>
    %142 = arith.addf %138, %141 : vector<16x128xf32>
    %c4_27 = arith.constant 4 : index
    %143 = memref.load %arg4[%c4_27] : memref<50xf32, #tpu.memory_space<smem>>
    %144 = vector.broadcast %143 : f32 to vector<16x128xf32>
    %145 = arith.mulf %144, %64 : vector<16x128xf32>
    %146 = arith.addf %142, %145 : vector<16x128xf32>
    %c5_28 = arith.constant 5 : index
    %147 = memref.load %arg4[%c5_28] : memref<50xf32, #tpu.memory_space<smem>>
    %148 = vector.broadcast %147 : f32 to vector<16x128xf32>
    %149 = arith.mulf %148, %76 : vector<16x128xf32>
    %150 = arith.addf %146, %149 : vector<16x128xf32>
    %c6_29 = arith.constant 6 : index
    %151 = memref.load %arg4[%c6_29] : memref<50xf32, #tpu.memory_space<smem>>
    %152 = vector.broadcast %151 : f32 to vector<16x128xf32>
    %153 = arith.mulf %152, %88 : vector<16x128xf32>
    %154 = arith.addf %150, %153 : vector<16x128xf32>
    %c7_30 = arith.constant 7 : index
    %155 = memref.load %arg4[%c7_30] : memref<50xf32, #tpu.memory_space<smem>>
    %156 = vector.broadcast %155 : f32 to vector<16x128xf32>
    %157 = arith.mulf %156, %100 : vector<16x128xf32>
    %158 = arith.addf %154, %157 : vector<16x128xf32>
    %c8_31 = arith.constant 8 : index
    %159 = memref.load %arg4[%c8_31] : memref<50xf32, #tpu.memory_space<smem>>
    %160 = vector.broadcast %159 : f32 to vector<16x128xf32>
    %161 = arith.mulf %160, %112 : vector<16x128xf32>
    %162 = arith.addf %158, %161 : vector<16x128xf32>
    %c9_32 = arith.constant 9 : index
    %163 = memref.load %arg4[%c9_32] : memref<50xf32, #tpu.memory_space<smem>>
    %164 = vector.broadcast %163 : f32 to vector<16x128xf32>
    %165 = arith.mulf %164, %124 : vector<16x128xf32>
    %166 = arith.addf %162, %165 : vector<16x128xf32>
    %cst_33 = arith.constant 0.000000e+00 : f32
    %167 = vector.broadcast %cst_33 : f32 to vector<16x128xf32>
    %168 = arith.maximumf %166, %167 : vector<16x128xf32>
    %c1_34 = arith.constant 1 : index
    %169 = memref.load %arg5[%c1_34] : memref<5xf32, #tpu.memory_space<smem>>
    %c10_35 = arith.constant 10 : index
    %170 = memref.load %arg4[%c10_35] : memref<50xf32, #tpu.memory_space<smem>>
    %171 = vector.broadcast %170 : f32 to vector<16x128xf32>
    %172 = arith.mulf %171, %16 : vector<16x128xf32>
    %173 = vector.broadcast %169 : f32 to vector<16x128xf32>
    %174 = arith.addf %173, %172 : vector<16x128xf32>
    %c11_36 = arith.constant 11 : index
    %175 = memref.load %arg4[%c11_36] : memref<50xf32, #tpu.memory_space<smem>>
    %176 = vector.broadcast %175 : f32 to vector<16x128xf32>
    %177 = arith.mulf %176, %28 : vector<16x128xf32>
    %178 = arith.addf %174, %177 : vector<16x128xf32>
    %c12_37 = arith.constant 12 : index
    %179 = memref.load %arg4[%c12_37] : memref<50xf32, #tpu.memory_space<smem>>
    %180 = vector.broadcast %179 : f32 to vector<16x128xf32>
    %181 = arith.mulf %180, %40 : vector<16x128xf32>
    %182 = arith.addf %178, %181 : vector<16x128xf32>
    %c13_38 = arith.constant 13 : index
    %183 = memref.load %arg4[%c13_38] : memref<50xf32, #tpu.memory_space<smem>>
    %184 = vector.broadcast %183 : f32 to vector<16x128xf32>
    %185 = arith.mulf %184, %52 : vector<16x128xf32>
    %186 = arith.addf %182, %185 : vector<16x128xf32>
    %c14_39 = arith.constant 14 : index
    %187 = memref.load %arg4[%c14_39] : memref<50xf32, #tpu.memory_space<smem>>
    %188 = vector.broadcast %187 : f32 to vector<16x128xf32>
    %189 = arith.mulf %188, %64 : vector<16x128xf32>
    %190 = arith.addf %186, %189 : vector<16x128xf32>
    %c15_40 = arith.constant 15 : index
    %191 = memref.load %arg4[%c15_40] : memref<50xf32, #tpu.memory_space<smem>>
    %192 = vector.broadcast %191 : f32 to vector<16x128xf32>
    %193 = arith.mulf %192, %76 : vector<16x128xf32>
    %194 = arith.addf %190, %193 : vector<16x128xf32>
    %c16_41 = arith.constant 16 : index
    %195 = memref.load %arg4[%c16_41] : memref<50xf32, #tpu.memory_space<smem>>
    %196 = vector.broadcast %195 : f32 to vector<16x128xf32>
    %197 = arith.mulf %196, %88 : vector<16x128xf32>
    %198 = arith.addf %194, %197 : vector<16x128xf32>
    %c17_42 = arith.constant 17 : index
    %199 = memref.load %arg4[%c17_42] : memref<50xf32, #tpu.memory_space<smem>>
    %200 = vector.broadcast %199 : f32 to vector<16x128xf32>
    %201 = arith.mulf %200, %100 : vector<16x128xf32>
    %202 = arith.addf %198, %201 : vector<16x128xf32>
    %c18_43 = arith.constant 18 : index
    %203 = memref.load %arg4[%c18_43] : memref<50xf32, #tpu.memory_space<smem>>
    %204 = vector.broadcast %203 : f32 to vector<16x128xf32>
    %205 = arith.mulf %204, %112 : vector<16x128xf32>
    %206 = arith.addf %202, %205 : vector<16x128xf32>
    %c19_44 = arith.constant 19 : index
    %207 = memref.load %arg4[%c19_44] : memref<50xf32, #tpu.memory_space<smem>>
    %208 = vector.broadcast %207 : f32 to vector<16x128xf32>
    %209 = arith.mulf %208, %124 : vector<16x128xf32>
    %210 = arith.addf %206, %209 : vector<16x128xf32>
    %cst_45 = arith.constant 0.000000e+00 : f32
    %211 = vector.broadcast %cst_45 : f32 to vector<16x128xf32>
    %212 = arith.maximumf %210, %211 : vector<16x128xf32>
    %c2_46 = arith.constant 2 : index
    %213 = memref.load %arg5[%c2_46] : memref<5xf32, #tpu.memory_space<smem>>
    %c20 = arith.constant 20 : index
    %214 = memref.load %arg4[%c20] : memref<50xf32, #tpu.memory_space<smem>>
    %215 = vector.broadcast %214 : f32 to vector<16x128xf32>
    %216 = arith.mulf %215, %16 : vector<16x128xf32>
    %217 = vector.broadcast %213 : f32 to vector<16x128xf32>
    %218 = arith.addf %217, %216 : vector<16x128xf32>
    %c21 = arith.constant 21 : index
    %219 = memref.load %arg4[%c21] : memref<50xf32, #tpu.memory_space<smem>>
    %220 = vector.broadcast %219 : f32 to vector<16x128xf32>
    %221 = arith.mulf %220, %28 : vector<16x128xf32>
    %222 = arith.addf %218, %221 : vector<16x128xf32>
    %c22 = arith.constant 22 : index
    %223 = memref.load %arg4[%c22] : memref<50xf32, #tpu.memory_space<smem>>
    %224 = vector.broadcast %223 : f32 to vector<16x128xf32>
    %225 = arith.mulf %224, %40 : vector<16x128xf32>
    %226 = arith.addf %222, %225 : vector<16x128xf32>
    %c23 = arith.constant 23 : index
    %227 = memref.load %arg4[%c23] : memref<50xf32, #tpu.memory_space<smem>>
    %228 = vector.broadcast %227 : f32 to vector<16x128xf32>
    %229 = arith.mulf %228, %52 : vector<16x128xf32>
    %230 = arith.addf %226, %229 : vector<16x128xf32>
    %c24 = arith.constant 24 : index
    %231 = memref.load %arg4[%c24] : memref<50xf32, #tpu.memory_space<smem>>
    %232 = vector.broadcast %231 : f32 to vector<16x128xf32>
    %233 = arith.mulf %232, %64 : vector<16x128xf32>
    %234 = arith.addf %230, %233 : vector<16x128xf32>
    %c25 = arith.constant 25 : index
    %235 = memref.load %arg4[%c25] : memref<50xf32, #tpu.memory_space<smem>>
    %236 = vector.broadcast %235 : f32 to vector<16x128xf32>
    %237 = arith.mulf %236, %76 : vector<16x128xf32>
    %238 = arith.addf %234, %237 : vector<16x128xf32>
    %c26 = arith.constant 26 : index
    %239 = memref.load %arg4[%c26] : memref<50xf32, #tpu.memory_space<smem>>
    %240 = vector.broadcast %239 : f32 to vector<16x128xf32>
    %241 = arith.mulf %240, %88 : vector<16x128xf32>
    %242 = arith.addf %238, %241 : vector<16x128xf32>
    %c27 = arith.constant 27 : index
    %243 = memref.load %arg4[%c27] : memref<50xf32, #tpu.memory_space<smem>>
    %244 = vector.broadcast %243 : f32 to vector<16x128xf32>
    %245 = arith.mulf %244, %100 : vector<16x128xf32>
    %246 = arith.addf %242, %245 : vector<16x128xf32>
    %c28 = arith.constant 28 : index
    %247 = memref.load %arg4[%c28] : memref<50xf32, #tpu.memory_space<smem>>
    %248 = vector.broadcast %247 : f32 to vector<16x128xf32>
    %249 = arith.mulf %248, %112 : vector<16x128xf32>
    %250 = arith.addf %246, %249 : vector<16x128xf32>
    %c29 = arith.constant 29 : index
    %251 = memref.load %arg4[%c29] : memref<50xf32, #tpu.memory_space<smem>>
    %252 = vector.broadcast %251 : f32 to vector<16x128xf32>
    %253 = arith.mulf %252, %124 : vector<16x128xf32>
    %254 = arith.addf %250, %253 : vector<16x128xf32>
    %cst_47 = arith.constant 0.000000e+00 : f32
    %255 = vector.broadcast %cst_47 : f32 to vector<16x128xf32>
    %256 = arith.maximumf %254, %255 : vector<16x128xf32>
    %c3_48 = arith.constant 3 : index
    %257 = memref.load %arg5[%c3_48] : memref<5xf32, #tpu.memory_space<smem>>
    %c30 = arith.constant 30 : index
    %258 = memref.load %arg4[%c30] : memref<50xf32, #tpu.memory_space<smem>>
    %259 = vector.broadcast %258 : f32 to vector<16x128xf32>
    %260 = arith.mulf %259, %16 : vector<16x128xf32>
    %261 = vector.broadcast %257 : f32 to vector<16x128xf32>
    %262 = arith.addf %261, %260 : vector<16x128xf32>
    %c31 = arith.constant 31 : index
    %263 = memref.load %arg4[%c31] : memref<50xf32, #tpu.memory_space<smem>>
    %264 = vector.broadcast %263 : f32 to vector<16x128xf32>
    %265 = arith.mulf %264, %28 : vector<16x128xf32>
    %266 = arith.addf %262, %265 : vector<16x128xf32>
    %c32 = arith.constant 32 : index
    %267 = memref.load %arg4[%c32] : memref<50xf32, #tpu.memory_space<smem>>
    %268 = vector.broadcast %267 : f32 to vector<16x128xf32>
    %269 = arith.mulf %268, %40 : vector<16x128xf32>
    %270 = arith.addf %266, %269 : vector<16x128xf32>
    %c33 = arith.constant 33 : index
    %271 = memref.load %arg4[%c33] : memref<50xf32, #tpu.memory_space<smem>>
    %272 = vector.broadcast %271 : f32 to vector<16x128xf32>
    %273 = arith.mulf %272, %52 : vector<16x128xf32>
    %274 = arith.addf %270, %273 : vector<16x128xf32>
    %c34 = arith.constant 34 : index
    %275 = memref.load %arg4[%c34] : memref<50xf32, #tpu.memory_space<smem>>
    %276 = vector.broadcast %275 : f32 to vector<16x128xf32>
    %277 = arith.mulf %276, %64 : vector<16x128xf32>
    %278 = arith.addf %274, %277 : vector<16x128xf32>
    %c35 = arith.constant 35 : index
    %279 = memref.load %arg4[%c35] : memref<50xf32, #tpu.memory_space<smem>>
    %280 = vector.broadcast %279 : f32 to vector<16x128xf32>
    %281 = arith.mulf %280, %76 : vector<16x128xf32>
    %282 = arith.addf %278, %281 : vector<16x128xf32>
    %c36 = arith.constant 36 : index
    %283 = memref.load %arg4[%c36] : memref<50xf32, #tpu.memory_space<smem>>
    %284 = vector.broadcast %283 : f32 to vector<16x128xf32>
    %285 = arith.mulf %284, %88 : vector<16x128xf32>
    %286 = arith.addf %282, %285 : vector<16x128xf32>
    %c37 = arith.constant 37 : index
    %287 = memref.load %arg4[%c37] : memref<50xf32, #tpu.memory_space<smem>>
    %288 = vector.broadcast %287 : f32 to vector<16x128xf32>
    %289 = arith.mulf %288, %100 : vector<16x128xf32>
    %290 = arith.addf %286, %289 : vector<16x128xf32>
    %c38 = arith.constant 38 : index
    %291 = memref.load %arg4[%c38] : memref<50xf32, #tpu.memory_space<smem>>
    %292 = vector.broadcast %291 : f32 to vector<16x128xf32>
    %293 = arith.mulf %292, %112 : vector<16x128xf32>
    %294 = arith.addf %290, %293 : vector<16x128xf32>
    %c39 = arith.constant 39 : index
    %295 = memref.load %arg4[%c39] : memref<50xf32, #tpu.memory_space<smem>>
    %296 = vector.broadcast %295 : f32 to vector<16x128xf32>
    %297 = arith.mulf %296, %124 : vector<16x128xf32>
    %298 = arith.addf %294, %297 : vector<16x128xf32>
    %cst_49 = arith.constant 0.000000e+00 : f32
    %299 = vector.broadcast %cst_49 : f32 to vector<16x128xf32>
    %300 = arith.maximumf %298, %299 : vector<16x128xf32>
    %c4_50 = arith.constant 4 : index
    %301 = memref.load %arg5[%c4_50] : memref<5xf32, #tpu.memory_space<smem>>
    %c40 = arith.constant 40 : index
    %302 = memref.load %arg4[%c40] : memref<50xf32, #tpu.memory_space<smem>>
    %303 = vector.broadcast %302 : f32 to vector<16x128xf32>
    %304 = arith.mulf %303, %16 : vector<16x128xf32>
    %305 = vector.broadcast %301 : f32 to vector<16x128xf32>
    %306 = arith.addf %305, %304 : vector<16x128xf32>
    %c41 = arith.constant 41 : index
    %307 = memref.load %arg4[%c41] : memref<50xf32, #tpu.memory_space<smem>>
    %308 = vector.broadcast %307 : f32 to vector<16x128xf32>
    %309 = arith.mulf %308, %28 : vector<16x128xf32>
    %310 = arith.addf %306, %309 : vector<16x128xf32>
    %c42 = arith.constant 42 : index
    %311 = memref.load %arg4[%c42] : memref<50xf32, #tpu.memory_space<smem>>
    %312 = vector.broadcast %311 : f32 to vector<16x128xf32>
    %313 = arith.mulf %312, %40 : vector<16x128xf32>
    %314 = arith.addf %310, %313 : vector<16x128xf32>
    %c43 = arith.constant 43 : index
    %315 = memref.load %arg4[%c43] : memref<50xf32, #tpu.memory_space<smem>>
    %316 = vector.broadcast %315 : f32 to vector<16x128xf32>
    %317 = arith.mulf %316, %52 : vector<16x128xf32>
    %318 = arith.addf %314, %317 : vector<16x128xf32>
    %c44 = arith.constant 44 : index
    %319 = memref.load %arg4[%c44] : memref<50xf32, #tpu.memory_space<smem>>
    %320 = vector.broadcast %319 : f32 to vector<16x128xf32>
    %321 = arith.mulf %320, %64 : vector<16x128xf32>
    %322 = arith.addf %318, %321 : vector<16x128xf32>
    %c45 = arith.constant 45 : index
    %323 = memref.load %arg4[%c45] : memref<50xf32, #tpu.memory_space<smem>>
    %324 = vector.broadcast %323 : f32 to vector<16x128xf32>
    %325 = arith.mulf %324, %76 : vector<16x128xf32>
    %326 = arith.addf %322, %325 : vector<16x128xf32>
    %c46 = arith.constant 46 : index
    %327 = memref.load %arg4[%c46] : memref<50xf32, #tpu.memory_space<smem>>
    %328 = vector.broadcast %327 : f32 to vector<16x128xf32>
    %329 = arith.mulf %328, %88 : vector<16x128xf32>
    %330 = arith.addf %326, %329 : vector<16x128xf32>
    %c47 = arith.constant 47 : index
    %331 = memref.load %arg4[%c47] : memref<50xf32, #tpu.memory_space<smem>>
    %332 = vector.broadcast %331 : f32 to vector<16x128xf32>
    %333 = arith.mulf %332, %100 : vector<16x128xf32>
    %334 = arith.addf %330, %333 : vector<16x128xf32>
    %c48 = arith.constant 48 : index
    %335 = memref.load %arg4[%c48] : memref<50xf32, #tpu.memory_space<smem>>
    %336 = vector.broadcast %335 : f32 to vector<16x128xf32>
    %337 = arith.mulf %336, %112 : vector<16x128xf32>
    %338 = arith.addf %334, %337 : vector<16x128xf32>
    %c49 = arith.constant 49 : index
    %339 = memref.load %arg4[%c49] : memref<50xf32, #tpu.memory_space<smem>>
    %340 = vector.broadcast %339 : f32 to vector<16x128xf32>
    %341 = arith.mulf %340, %124 : vector<16x128xf32>
    %342 = arith.addf %338, %341 : vector<16x128xf32>
    %cst_51 = arith.constant 0.000000e+00 : f32
    %343 = vector.broadcast %cst_51 : f32 to vector<16x128xf32>
    %344 = arith.maximumf %342, %343 : vector<16x128xf32>
    %c0_52 = arith.constant 0 : index
    %345 = memref.load %arg7[%c0_52] : memref<1xf32, #tpu.memory_space<smem>>
    %c0_53 = arith.constant 0 : index
    %346 = memref.load %arg6[%c0_53] : memref<5xf32, #tpu.memory_space<smem>>
    %347 = vector.broadcast %346 : f32 to vector<16x128xf32>
    %348 = arith.mulf %347, %168 : vector<16x128xf32>
    %349 = vector.broadcast %345 : f32 to vector<16x128xf32>
    %350 = arith.addf %349, %348 : vector<16x128xf32>
    %c1_54 = arith.constant 1 : index
    %351 = memref.load %arg6[%c1_54] : memref<5xf32, #tpu.memory_space<smem>>
    %352 = vector.broadcast %351 : f32 to vector<16x128xf32>
    %353 = arith.mulf %352, %212 : vector<16x128xf32>
    %354 = arith.addf %350, %353 : vector<16x128xf32>
    %c2_55 = arith.constant 2 : index
    %355 = memref.load %arg6[%c2_55] : memref<5xf32, #tpu.memory_space<smem>>
    %356 = vector.broadcast %355 : f32 to vector<16x128xf32>
    %357 = arith.mulf %356, %256 : vector<16x128xf32>
    %358 = arith.addf %354, %357 : vector<16x128xf32>
    %c3_56 = arith.constant 3 : index
    %359 = memref.load %arg6[%c3_56] : memref<5xf32, #tpu.memory_space<smem>>
    %360 = vector.broadcast %359 : f32 to vector<16x128xf32>
    %361 = arith.mulf %360, %300 : vector<16x128xf32>
    %362 = arith.addf %358, %361 : vector<16x128xf32>
    %c4_57 = arith.constant 4 : index
    %363 = memref.load %arg6[%c4_57] : memref<5xf32, #tpu.memory_space<smem>>
    %364 = vector.broadcast %363 : f32 to vector<16x128xf32>
    %365 = arith.mulf %364, %344 : vector<16x128xf32>
    %366 = arith.addf %362, %365 : vector<16x128xf32>
    %cst_58 = arith.constant 1.000000e+00 : f32
    %367 = vector.broadcast %cst_58 : f32 to vector<16x128xf32>
    %368 = arith.minimumf %366, %367 : vector<16x128xf32>
    %cst_59 = arith.constant -1.000000e+00 : f32
    %369 = vector.broadcast %cst_59 : f32 to vector<16x128xf32>
    %370 = arith.maximumf %368, %369 : vector<16x128xf32>
    %371 = vector.shape_cast %370 : vector<16x128xf32> to vector<1x16x128xf32>
    %c0_60 = arith.constant 0 : index
    %c0_61 = arith.constant 0 : index
    %c0_62 = arith.constant 0 : index
    %372 = vector.load %arg8[%c0_60, %c0_61, %c0_62] : memref<1x16x128xf32, #tpu.memory_space<vmem>>, vector<1x16x128xf32>
    tpu.vector_store %arg8[%c0_60, %c0_61, %c0_62], %371 {strides = array<i32>} : memref<1x16x128xf32, #tpu.memory_space<vmem>>, vector<1x16x128xf32>,
    return
  }
  func.func @transform_0(%arg0: i32) -> (i32, i32, i32) {
    %c0_i32 = arith.constant 0 : i32
    %c0_i32_0 = arith.constant 0 : i32
    %c0_i32_1 = arith.constant 0 : i32
    return %c0_i32, %arg0, %c0_i32_0 : i32, i32, i32
  }
  func.func @transform_1(%arg0: i32) -> i32 {
    %c0_i32 = arith.constant 0 : i32
    %c0_i32_0 = arith.constant 0 : i32
    return %c0_i32 : i32
  }
  func.func @transform_2(%arg0: i32) -> i32 {
    %c0_i32 = arith.constant 0 : i32
    %c0_i32_0 = arith.constant 0 : i32
    return %c0_i32 : i32
  }
  func.func @transform_3(%arg0: i32) -> i32 {
    %c0_i32 = arith.constant 0 : i32
    %c0_i32_0 = arith.constant 0 : i32
    return %c0_i32 : i32
  }
  func.func @transform_4(%arg0: i32) -> i32 {
    %c0_i32 = arith.constant 0 : i32
    %c0_i32_0 = arith.constant 0 : i32
    return %c0_i32 : i32
  }
  func.func @transform_5(%arg0: i32) -> i32 {
    %c0_i32 = arith.constant 0 : i32
    %c0_i32_0 = arith.constant 0 : i32
    return %c0_i32 : i32
  }
  func.func @transform_6(%arg0: i32) -> i32 {
    %c0_i32 = arith.constant 0 : i32
    %c0_i32_0 = arith.constant 0 : i32
    return %c0_i32 : i32
  }
  func.func @transform_7(%arg0: i32) -> (i32, i32, i32) {
    %c0_i32 = arith.constant 0 : i32
    %c0_i32_0 = arith.constant 0 : i32
    %c0_i32_1 = arith.constant 0 : i32
    return %c0_i32, %arg0, %c0_i32_0 : i32, i32, i32
  }
}

</mosaic_0001>

<bundles_post_ra>
// kernel: actor_forward.1
= control target key start
LH: loop header
LB: loop body
LE: loop exit
PB: predicated region body
PF: predicated region fallthrough
CT: control target
= control target key end

     0   :  { %13 = vsyncpa [#allocation4], 0  ;;  %s1327_s0 = inlined_call_operand.vmem [shape: f32[2,16,128], index: 0, kind: input, shape index: {}]   ;;  %s1328_s1 = inlined_call_operand.vmem [shape: f32[20], index: 1, kind: input, shape index: {}]   ;;  %s1329_s2 = inlined_call_operand.vmem [shape: f32[10], index: 2, kind: input, shape index: {}]   ;;  %s1330_s3 = inlined_call_operand.vmem [shape: f32[50], index: 3, kind: input, shape index: {}]   ;;  %s1331_s4 = inlined_call_operand.vmem [shape: f32[5], index: 4, kind: input, shape index: {}]   ;;  %s1332_s5 = inlined_call_operand.vmem [shape: f32[5], index: 5, kind: input, shape index: {}]   ;;  %s1333_s6 = inlined_call_operand.<no memory space> [shape: f32[1], index: 6, kind: input, shape index: {}]   ;;  %s1334_s7 = inlined_call_operand.vmem [shape: f32[1,16,128], index: 7, kind: output, shape index: {}]  }
   0x1   :  { %14 = vsyncpa [#allocation6], 0  ;;  %s34_s26 = sshll.u32 %s1329_s2, 4  ;;  %s35_s26 = int_to_ptr.vmem [resolvable:$true] %s34_s26 }
   0x2   :  { %15 = vsyncpa [#allocation9], 0  ;;  %s54_s29 = sshll.u32 %s1331_s4, 4  ;;  %s707_s30 = scalar_lea.vmem %s35_s26, 16  ;;  %s55_s29 = int_to_ptr.vmem [resolvable:$true] %s54_s29 }
   0x3   :  { %p708_p0 = scmp.ne.s32.totalorder %s35_s26, %s707_s30  ;;  %p712_p1 = scmp.lt.s32.totalorder %s35_s26, %s35_s26 }
   0x4   :  { %p713_p2 = scmp.lt.s32.totalorder %s707_s30, %s707_s30 }
   0x6   :  { %p714_p3 = por %p713_p2, %p712_p1 }
   0x8   :  { %p715_p4 = pnand %p714_p3, %p708_p0 }
   0xa   :  { %718 = shalt.err (!%p715_p4)
}
   0xb   :  { %s773_s8 = smov [#allocation5]   ;;  %s719_s9 = scalar_lea.vmem %s55_s29, 16 }
   0xc   :  { %37 = dma.vmem_to_smem %s35_s26, 16, %s773_s8, [#allocation6]  }
   0xd   :  { %p720_p5 = scmp.ne.s32.totalorder %s55_s29, %s719_s9  ;;  %p724_p6 = scmp.lt.s32.totalorder %s55_s29, %s55_s29 }
   0xe   :  { %p725_p7 = scmp.lt.s32.totalorder %s719_s9, %s719_s9 }
  0x10   :  { %p726_p8 = por %p725_p7, %p724_p6 }
  0x12   :  { %p727_p9 = pnand %p726_p8, %p720_p5 }
  0x14   :  { %730 = shalt.err (!%p727_p9)
}
  0x15   :  { %s774_s2 = smov [#allocation8]   ;;  %s24_s11 = sshll.u32 %s1328_s1, 4  ;;  %s25_s11 = int_to_ptr.vmem [resolvable:$true] %s24_s11 }
  0x16   :  { %57 = dma.vmem_to_smem %s55_s29, 16, %s774_s2, [#allocation9]  }
  0x17   :  { %s44_s14 = sshll.u32 %s1330_s3, 4  ;;  %s731_s15 = scalar_lea.vmem %s25_s11, 16  ;;  %s45_s14 = int_to_ptr.vmem [resolvable:$true] %s44_s14 }
  0x18   :  { %p732_p10 = scmp.ne.s32.totalorder %s25_s11, %s731_s15  ;;  %p736_p11 = scmp.lt.s32.totalorder %s25_s11, %s25_s11 }
  0x19   :  { %p737_p12 = scmp.lt.s32.totalorder %s731_s15, %s731_s15 }
  0x1b   :  { %p738_p13 = por %p737_p12, %p736_p11 }
  0x1d   :  { %p739_p0 = pnand %p738_p13, %p732_p10 }
  0x1f   :  { %742 = shalt.err (!%p739_p0)
}
  0x20   :  { %s775_s16 = smov [#allocation3]   ;;  %s743_s17 = scalar_lea.vmem %s45_s14, 16 }
  0x21   :  { %27 = dma.vmem_to_smem %s25_s11, 16, %s775_s16, [#allocation4]  }
  0x22   :  { %p744_p1 = scmp.ne.s32.totalorder %s45_s14, %s743_s17  ;;  %p748_p2 = scmp.lt.s32.totalorder %s45_s14, %s45_s14 }
  0x23   :  { %p749_p3 = scmp.lt.s32.totalorder %s743_s17, %s743_s17 }
  0x25   :  { %p750_p4 = por %p749_p3, %p748_p2 }
  0x27   :  { %p751_p5 = pnand %p750_p4, %p744_p1 }
  0x29   :  { %754 = shalt.err (!%p751_p5)
}
  0x2a   :  { %s776_s1 = smov [#allocation7]   ;;  %s64_s19 = sshll.u32 %s1332_s5, 4  ;;  %s65_s19 = int_to_ptr.vmem [resolvable:$true] %s64_s19 }
  0x2b   :  { %47 = dma.vmem_to_smem %s45_s14, 16, %s776_s1, [#allocation6]  }
  0x2c   :  { %s755_s20 = scalar_lea.vmem %s65_s19, 16  ;;  %p760_p7 = scmp.lt.s32.totalorder %s65_s19, %s65_s19 }
  0x2d   :  { %p756_p6 = scmp.ne.s32.totalorder %s65_s19, %s755_s20  ;;  %p761_p8 = scmp.lt.s32.totalorder %s755_s20, %s755_s20 }
  0x2f   :  { %p762_p9 = por %p761_p8, %p760_p7 }
  0x31   :  { %p763_p10 = pnand %p762_p9, %p756_p6 }
  0x33   :  { %766 = shalt.err (!%p763_p10)
}
  0x34   :  { %s777_s21 = smov [#allocation10]  }
  0x35   :  { %67 = dma.vmem_to_smem %s65_s19, 16, %s777_s21, [#allocation9]  }
  0x36   :  { %767 = dma.done.wait [#allocation4], 16  }
  0x37   :  { %768 = vsyncadd [#allocation4], 4294967280 }
  0x38   :  { %769 = dma.done.wait [#allocation6], 32  }
  0x39   :  { %770 = vsyncadd [#allocation6], 4294967264 }
  0x3a   :  { %771 = dma.done.wait [#allocation9], 32  }
  0x3b   :  { %772 = vsyncadd [#allocation9], 4294967264 }
  0x3c   :  { %85 = sfence }
  0x3d   :  { %s90_s22 = sld [smem:[#allocation5]]  ;;  %v838_v0 = vld [vmem:[%s1327_s0] sm:$0xff]  ;;  %v843_v1 = vld [vmem:[%s1327_s0 + $0x8] sm:$0xff]  ;;  %v848_v2 = vld [vmem:[%s1327_s0 + $0x10] sm:$0xff] }
  0x3e   :  { %s91_s23 = sld [smem:[#allocation3]]  ;;  %v853_v3 = vld [vmem:[%s1327_s0 + $0x18] sm:$0xff] }
  0x3f   :  { %s615_s5 = sld [smem:[#allocation3 + $0x1]] }
  0x40   :  { %s833_s24 = sld [smem:[#allocation5 + $0x1]] }
  0x41   :  { %s617_s25 = sld [smem:[#allocation3 + $0x2]] }
  0x42   :  { %s618_s30 = sld [smem:[#allocation3 + $0x3]] }
  0x43   :  { %s855_s10 = sld [smem:[#allocation5 + $0x2]]  ;;  %v95_v5 = vstv %s90_s22 }
  0x44   :  { %v92_v4 = vstv %s91_s23  ;;  %s620_s11 = sld [smem:[#allocation3 + $0x4]] }
  0x45   :  { %v93_v6 = vmul.f32 %v92_v4, %v838_v0  ;;  %v94_v7 = vmul.f32 %v92_v4, %v843_v1  ;;  %v99_v8 = vstv %s615_s5  ;;  %s859_s12 = sld [smem:[#allocation3 + $0x5]] }
  0x46   :  { %v100_v9 = vmul.f32 %v99_v8, %v848_v2  ;;  %v101_v10 = vmul.f32 %v99_v8, %v853_v3  ;;  %s863_s13 = sld [smem:[#allocation5 + $0x3]]  ;;  %v111_v14 = vstv %s833_s24 }
  0x47   :  { %v96_v11 = vadd.f32 %v95_v5, %v93_v6  ;;  %v97_v12 = vadd.f32 %v95_v5, %v94_v7  ;;  %v108_v13 = vstv %s617_s25  ;;  %s866_s0 = sld [smem:[#allocation3 + $0x6]] }
  0x48   :  { %v109_v15 = vmul.f32 %v108_v13, %v838_v0  ;;  %v110_v16 = vmul.f32 %v108_v13, %v843_v1  ;;  %v115_v17 = vstv %s618_s30  ;;  %s870_s14 = sld [smem:[#allocation3 + $0x7]] }
  0x49   :  { %v102_v18 = vadd.f32 %v100_v9, %v96_v11  ;;  %v103_v19 = vadd.f32 %v101_v10, %v97_v12  ;;  %v116_v20 = vmul.f32 %v115_v17, %v848_v2  ;;  %v117_v21 = vmul.f32 %v115_v17, %v853_v3  ;;  %s874_s15 = sld [smem:[#allocation5 + $0x4]] }
  0x4a   :  { %v112_v22 = vadd.f32 %v111_v14, %v109_v15  ;;  %v113_v23 = vadd.f32 %v111_v14, %v110_v16  ;;  %v124_v24 = vstv %s620_s11  ;;  %v127_v25 = vstv %s855_s10  ;;  %s877_s16 = sld [smem:[#allocation3 + $0x8]] }
  0x4b   :  { %v879_v26 = vmax.f32 %v102_v18, 0.0  ;;  %v881_v27 = vmax.f32 %v103_v19, 0.0  ;;  %v125_v28 = vmul.f32 %v124_v24, %v838_v0  ;;  %v126_v29 = vmul.f32 %v124_v24, %v843_v1  ;;  %s885_s17 = sld [smem:[#allocation3 + $0x9]] }
  0x4c   :  { %v118_v30 = vadd.f32 %v116_v20, %v112_v22  ;;  %v119_v31 = vadd.f32 %v117_v21, %v113_v23  ;;  %v131_v32 = vstv %s859_s12  ;;  %v143_v33 = vstv %s863_s13  ;;  %s889_s1 = sld [smem:[#allocation5 + $0x5]] }
  0x4d   :  { %v128_v34 = vadd.f32 %v127_v25, %v125_v28  ;;  %v129_v35 = vadd.f32 %v127_v25, %v126_v29  ;;  %v132_v36 = vmul.f32 %v131_v32, %v848_v2  ;;  %v133_v37 = vmul.f32 %v131_v32, %v853_v3  ;;  %s893_s3 = sld [smem:[#allocation3 + $0xa]] }
  0x4e   :  { %v895_v38 = vmax.f32 %v118_v30, 0.0  ;;  %v897_v39 = vmax.f32 %v119_v31, 0.0  ;;  %v140_v40 = vstv %s866_s0  ;;  %v147_v41 = vstv %s870_s14  ;;  %s901_s18 = sld [smem:[#allocation3 + $0xb]] }
  0x4f   :  { %v134_v42 = vadd.f32 %v132_v36, %v128_v34  ;;  %v135_v43 = vadd.f32 %v133_v37, %v129_v35  ;;  %v141_v44 = vmul.f32 %v140_v40, %v838_v0  ;;  %v142_v45 = vmul.f32 %v140_v40, %v843_v1  ;;  %s905_s19 = sld [smem:[#allocation5 + $0x6]] }
  0x50   :  { %v148_v46 = vmul.f32 %v147_v41, %v848_v2  ;;  %v149_v47 = vmul.f32 %v147_v41, %v853_v3  ;;  %v156_v48 = vstv %s877_s16  ;;  %v159_v49 = vstv %s874_s15  ;;  %s911_s20 = sld [smem:[#allocation3 + $0xc]] }
  0x51   :  { %v913_v50 = vmax.f32 %v134_v42, 0.0  ;;  %v915_v51 = vmax.f32 %v135_v43, 0.0  ;;  %v144_v52 = vadd.f32 %v143_v33, %v141_v44  ;;  %v145_v53 = vadd.f32 %v143_v33, %v142_v45  ;;  %s917_s21 = sld [smem:[#allocation3 + $0xd]] }
  0x52   :  { %v157_v54 = vmul.f32 %v156_v48, %v838_v0  ;;  %v158_v55 = vmul.f32 %v156_v48, %v843_v1  ;;  %v163_v56 = vstv %s885_s17  ;;  %v175_v57 = vstv %s889_s1  ;;  %s923_s22 = sld [smem:[#allocation5 + $0x7]] }
  0x53   :  { %v150_v58 = vadd.f32 %v148_v46, %v144_v52  ;;  %v151_v59 = vadd.f32 %v149_v47, %v145_v53  ;;  %v164_v60 = vmul.f32 %v163_v56, %v848_v2  ;;  %v165_v61 = vmul.f32 %v163_v56, %v853_v3  ;;  %s927_s23 = sld [smem:[#allocation3 + $0xe]] }
  0x54   :  { %v160_v62 = vadd.f32 %v159_v49, %v157_v54  ;;  %v161_v63 = vadd.f32 %v159_v49, %v158_v55  ;;  %v172_v4 = vstv %s893_s3  ;;  %v179_v5 = vstv %s901_s18  ;;  %s931_s5 = sld [smem:[#allocation3 + $0xf]] }
  0x55   :  { %v933_v6 = vmax.f32 %v150_v58, 0.0  ;;  %v935_v7 = vmax.f32 %v151_v59, 0.0  ;;  %v173_v8 = vmul.f32 %v172_v4, %v838_v0  ;;  %v174_v9 = vmul.f32 %v172_v4, %v843_v1  ;;  %s939_s24 = sld [smem:[#allocation5 + $0x8]] }
  0x56   :  { %v166_v10 = vadd.f32 %v164_v60, %v160_v62  ;;  %v167_v11 = vadd.f32 %v165_v61, %v161_v63  ;;  %v180_v12 = vmul.f32 %v179_v5, %v848_v2  ;;  %v181_v13 = vmul.f32 %v179_v5, %v853_v3  ;;  %s943_s25 = sld [smem:[#allocation3 + $0x10]] }
  0x57   :  { %v176_v14 = vadd.f32 %v175_v57, %v173_v8  ;;  %v177_v15 = vadd.f32 %v175_v57, %v174_v9  ;;  %v188_v16 = vstv %s911_s20  ;;  %v191_v17 = vstv %s905_s19  ;;  %s947_s26 = sld [smem:[#allocation3 + $0x11]] }
  0x58   :  { %v949_v18 = vmax.f32 %v166_v10, 0.0  ;;  %v951_v19 = vmax.f32 %v167_v11, 0.0  ;;  %v189_v20 = vmul.f32 %v188_v16, %v838_v0  ;;  %v190_v21 = vmul.f32 %v188_v16, %v843_v1  ;;  %s955_s27 = sld [smem:[#allocation5 + $0x9]] }
  0x59   :  { %v182_v22 = vadd.f32 %v180_v12, %v176_v14  ;;  %v183_v23 = vadd.f32 %v181_v13, %v177_v15  ;;  %v195_v24 = vstv %s917_s21  ;;  %v204_v25 = vstv %s927_s23  ;;  %s959_s28 = sld [smem:[#allocation3 + $0x12]] }
  0x5a   :  { %v192_v28 = vadd.f32 %v191_v17, %v189_v20  ;;  %v193_v29 = vadd.f32 %v191_v17, %v190_v21  ;;  %v196_v30 = vmul.f32 %v195_v24, %v848_v2  ;;  %v197_v31 = vmul.f32 %v195_v24, %v853_v3  ;;  %s963_s29 = sld [smem:[#allocation3 + $0x13]] }
  0x5b   :  { %v965_v32 = vmax.f32 %v182_v22, 0.0  ;;  %v967_v33 = vmax.f32 %v183_v23, 0.0  ;;  %v205_v34 = vmul.f32 %v204_v25, %v838_v0  ;;  %v206_v35 = vmul.f32 %v204_v25, %v843_v1  ;;  %s971_s30 = sld [smem:[#allocation8]] }
  0x5c   :  { %v198_v36 = vadd.f32 %v196_v30, %v192_v28  ;;  %v199_v37 = vadd.f32 %v197_v31, %v193_v29  ;;  %v207_v40 = vstv %s923_s22  ;;  %v211_v41 = vstv %s931_s5  ;;  %s975_s8 = sld [smem:[#allocation7]] }
  0x5d   :  { %v208_v42 = vadd.f32 %v207_v40, %v205_v34  ;;  %v209_v43 = vadd.f32 %v207_v40, %v206_v35  ;;  %v212_v44 = vmul.f32 %v211_v41, %v848_v2  ;;  %v213_v45 = vmul.f32 %v211_v41, %v853_v3  ;;  %s979_s9 = sld [smem:[#allocation7 + $0x1]] }
  0x5e   :  { %v981_v46 = vmax.f32 %v198_v36, 0.0  ;;  %v983_v47 = vmax.f32 %v199_v37, 0.0  ;;  %v220_v48 = vstv %s943_s25  ;;  %v223_v49 = vstv %s939_s24  ;;  %s987_s2 = sld [smem:[#allocation7 + $0x2]] }
  0x5f   :  { %v214_v52 = vadd.f32 %v212_v44, %v208_v42  ;;  %v215_v53 = vadd.f32 %v213_v45, %v209_v43  ;;  %v221_v54 = vmul.f32 %v220_v48, %v838_v0  ;;  %v222_v55 = vmul.f32 %v220_v48, %v843_v1  ;;  %s995_s4 = sld [smem:[#allocation7 + $0x3]] }
  0x60   :  { %v227_v56 = vstv %s947_s26  ;;  %v236_v57 = vstv %s959_s28  ;;  %v239_v58 = vstv %s955_s27  ;;  %v243_v59 = vstv %s963_s29  ;;  %s1001_s10 = sld [smem:[#allocation7 + $0x4]] }
  0x61   :  { %v997_v60 = vmax.f32 %v214_v52, 0.0  ;;  %v999_v61 = vmax.f32 %v215_v53, 0.0  ;;  %v224_v62 = vadd.f32 %v223_v49, %v221_v54  ;;  %v225_v63 = vadd.f32 %v223_v49, %v222_v55  ;;  %s1007_s11 = sld [smem:[#allocation7 + $0x5]] }
  0x62   :  { %v228_v4 = vmul.f32 %v227_v56, %v848_v2  ;;  %v229_v5 = vmul.f32 %v227_v56, %v853_v3  ;;  %v237_v8 = vmul.f32 %v236_v57, %v838_v0  ;;  %v238_v9 = vmul.f32 %v236_v57, %v843_v1  ;;  %s1013_s12 = sld [smem:[#allocation7 + $0x6]] }
  0x63   :  { %v244_v10 = vmul.f32 %v243_v59, %v848_v2  ;;  %v245_v11 = vmul.f32 %v243_v59, %v853_v3  ;;  %v252_v12 = vstv %s975_s8  ;;  %v255_v13 = vstv %s971_s30  ;;  %s1015_s13 = sld [smem:[#allocation7 + $0x7]] }
  0x64   :  { %v230_v14 = vadd.f32 %v228_v4, %v224_v62  ;;  %v231_v15 = vadd.f32 %v229_v5, %v225_v63  ;;  %v240_v16 = vadd.f32 %v239_v58, %v237_v8  ;;  %v241_v17 = vadd.f32 %v239_v58, %v238_v9  ;;  %s1021_s0 = sld [smem:[#allocation7 + $0x8]] }
  0x65   :  { %v253_v0 = vmul.f32 %v252_v12, %v879_v26  ;;  %v254_v1 = vmul.f32 %v252_v12, %v881_v27  ;;  %v259_v20 = vstv %s979_s9  ;;  %v265_v21 = vstv %s987_s2  ;;  %s1027_s14 = sld [smem:[#allocation7 + $0x9]] }
  0x66   :  { %v1023_v2 = vmax.f32 %v230_v14, 0.0  ;;  %v1025_v3 = vmax.f32 %v231_v15, 0.0  ;;  %v246_v22 = vadd.f32 %v244_v10, %v240_v16  ;;  %v247_v23 = vadd.f32 %v245_v11, %v241_v17  ;;  %s1031_s15 = sld [smem:[#allocation7 + $0xa]] }
  0x67   :  { %v256_v24 = vadd.f32 %v255_v13, %v253_v0  ;;  %v257_v25 = vadd.f32 %v255_v13, %v254_v1  ;;  %v260_v28 = vmul.f32 %v259_v20, %v895_v38  ;;  %v261_v29 = vmul.f32 %v259_v20, %v897_v39  ;;  %s1039_s16 = sld [smem:[#allocation8 + $0x1]] }
  0x68   :  { %v1033_v30 = vmax.f32 %v246_v22, 0.0  ;;  %v1035_v31 = vmax.f32 %v247_v23, 0.0  ;;  %v266_v34 = vmul.f32 %v265_v21, %v913_v50  ;;  %v267_v35 = vmul.f32 %v265_v21, %v915_v51  ;;  %s1043_s17 = sld [smem:[#allocation7 + $0xb]] }
  0x69   :  { %v262_v36 = vadd.f32 %v260_v28, %v256_v24  ;;  %v263_v37 = vadd.f32 %v261_v29, %v257_v25  ;;  %v271_v40 = vstv %s995_s4  ;;  %v277_v41 = vstv %s1001_s10  ;;  %s1049_s1 = sld [smem:[#allocation7 + $0xc]] }
  0x6a   :  { %v272_v42 = vmul.f32 %v271_v40, %v933_v6  ;;  %v273_v43 = vmul.f32 %v271_v40, %v935_v7  ;;  %v278_v44 = vmul.f32 %v277_v41, %v949_v18  ;;  %v279_v45 = vmul.f32 %v277_v41, %v951_v19  ;;  %s1053_s3 = sld [smem:[#allocation7 + $0xd]] }
  0x6b   :  { %v268_v48 = vadd.f32 %v266_v34, %v262_v36  ;;  %v269_v49 = vadd.f32 %v267_v35, %v263_v37  ;;  %v283_v52 = vstv %s1007_s11  ;;  %v289_v53 = vstv %s1013_s12  ;;  %s1061_s18 = sld [smem:[#allocation7 + $0xe]] }
  0x6c   :  { %v284_v54 = vmul.f32 %v283_v52, %v965_v32  ;;  %v285_v55 = vmul.f32 %v283_v52, %v967_v33  ;;  %v290_v56 = vmul.f32 %v289_v53, %v981_v46  ;;  %v291_v57 = vmul.f32 %v289_v53, %v983_v47  ;;  %s1067_s19 = sld [smem:[#allocation7 + $0xf]] }
  0x6d   :  { %v274_v58 = vadd.f32 %v272_v42, %v268_v48  ;;  %v275_v59 = vadd.f32 %v273_v43, %v269_v49  ;;  %v295_v62 = vstv %s1015_s13  ;;  %v301_v63 = vstv %s1021_s0  ;;  %s1075_s20 = sld [smem:[#allocation7 + $0x10]] }
  0x6e   :  { %v296_v4 = vmul.f32 %v295_v62, %v997_v60  ;;  %v297_v5 = vmul.f32 %v295_v62, %v999_v61  ;;  %v302_v8 = vmul.f32 %v301_v63, %v1023_v2  ;;  %v303_v9 = vmul.f32 %v301_v63, %v1025_v3  ;;  %s1079_s21 = sld [smem:[#allocation7 + $0x11]] }
  0x6f   :  { %v280_v10 = vadd.f32 %v278_v44, %v274_v58  ;;  %v281_v11 = vadd.f32 %v279_v45, %v275_v59  ;;  %v307_v12 = vstv %s1027_s14  ;;  %v316_v13 = vstv %s1031_s15  ;;  %s1083_s22 = sld [smem:[#allocation7 + $0x12]] }
  0x70   :  { %v308_v14 = vmul.f32 %v307_v12, %v1033_v30  ;;  %v309_v15 = vmul.f32 %v307_v12, %v1035_v31  ;;  %v317_v16 = vmul.f32 %v316_v13, %v879_v26  ;;  %v318_v17 = vmul.f32 %v316_v13, %v881_v27  ;;  %s1087_s23 = sld [smem:[#allocation7 + $0x13]] }
  0x71   :  { %v286_v0 = vadd.f32 %v284_v54, %v280_v10  ;;  %v287_v1 = vadd.f32 %v285_v55, %v281_v11  ;;  %v319_v20 = vstv %s1039_s16  ;;  %v323_v21 = vstv %s1043_s17  ;;  %s1091_s5 = sld [smem:[#allocation8 + $0x2]] }
  0x72   :  { %v320_v22 = vadd.f32 %v319_v20, %v317_v16  ;;  %v321_v23 = vadd.f32 %v319_v20, %v318_v17  ;;  %v324_v24 = vmul.f32 %v323_v21, %v895_v38  ;;  %v325_v25 = vmul.f32 %v323_v21, %v897_v39  ;;  %s1095_s24 = sld [smem:[#allocation7 + $0x14]] }
  0x73   :  { %v292_v28 = vadd.f32 %v290_v56, %v286_v0  ;;  %v293_v29 = vadd.f32 %v291_v57, %v287_v1  ;;  %v329_v34 = vstv %s1049_s1  ;;  %v335_v35 = vstv %s1053_s3  ;;  %s1099_s25 = sld [smem:[#allocation7 + $0x15]] }
  0x74   :  { %v326_v36 = vadd.f32 %v324_v24, %v320_v22  ;;  %v327_v37 = vadd.f32 %v325_v25, %v321_v23  ;;  %v330_v40 = vmul.f32 %v329_v34, %v913_v50  ;;  %v331_v41 = vmul.f32 %v329_v34, %v915_v51  ;;  %s1103_s26 = sld [smem:[#allocation7 + $0x16]] }
  0x75   :  { %v298_v42 = vadd.f32 %v296_v4, %v292_v28  ;;  %v299_v43 = vadd.f32 %v297_v5, %v293_v29  ;;  %v336_v44 = vmul.f32 %v335_v35, %v933_v6  ;;  %v337_v45 = vmul.f32 %v335_v35, %v935_v7  ;;  %s1111_s27 = sld [smem:[#allocation7 + $0x17]] }
  0x76   :  { %v332_v48 = vadd.f32 %v330_v40, %v326_v36  ;;  %v333_v49 = vadd.f32 %v331_v41, %v327_v37  ;;  %v341_v52 = vstv %s1061_s18  ;;  %v347_v53 = vstv %s1067_s19  ;;  %s1118_s30 = sld [smem:[#allocation7 + $0x18]] }
  0x77   :  { %v304_v54 = vadd.f32 %v302_v8, %v298_v42  ;;  %v305_v55 = vadd.f32 %v303_v9, %v299_v43  ;;  %v342_v56 = vmul.f32 %v341_v52, %v949_v18  ;;  %v343_v57 = vmul.f32 %v341_v52, %v951_v19  ;;  %s1125_s8 = sld [smem:[#allocation7 + $0x19]] }
  0x78   :  { %v338_v58 = vadd.f32 %v336_v44, %v332_v48  ;;  %v339_v59 = vadd.f32 %v337_v45, %v333_v49  ;;  %v348_v62 = vmul.f32 %v347_v53, %v965_v32  ;;  %v349_v63 = vmul.f32 %v347_v53, %v967_v33  ;;  %s1129_s9 = sld [smem:[#allocation7 + $0x1a]] }
  0x79   :  { %v1107_v4 = vadd.f32 %v308_v14, %v304_v54  ;;  %v353_v5 = vstv %s1075_s20  ;;  %v359_v10 = vstv %s1079_s21  ;;  %v575_v8 = vstv %s1333_s6  ;;  %s1135_s2 = sld [smem:[#allocation7 + $0x1b]] }
  0x7a   :  { %v344_v9 = vadd.f32 %v342_v56, %v338_v58  ;;  %v345_v11 = vadd.f32 %v343_v57, %v339_v59  ;;  %v354_v12 = vmul.f32 %v353_v5, %v981_v46  ;;  %v355_v13 = vmul.f32 %v353_v5, %v983_v47  ;;  %s1139_s4 = sld [smem:[#allocation7 + $0x1c]] }
  0x7b   :  { %v1120_v14 = vadd.f32 %v309_v15, %v305_v55  ;;  %v312_v16 = vmax.f32 %v1107_v4, 0.0  ;;  %v360_v17 = vmul.f32 %v359_v10, %v997_v60  ;;  %v361_v0 = vmul.f32 %v359_v10, %v999_v61  ;;  %s1145_s10 = sld [smem:[#allocation7 + $0x1d]] }
  0x7c   :  { %v350_v1 = vadd.f32 %v348_v62, %v344_v9  ;;  %v351_v20 = vadd.f32 %v349_v63, %v345_v11  ;;  %v365_v21 = vstv %s1083_s22  ;;  %v371_v22 = vstv %s1087_s23  ;;  %s1149_s11 = sld [smem:[#allocation7 + $0x1e]] }
  0x7d   :  { %v366_v15 = vmul.f32 %v365_v21, %v1023_v2  ;;  %v367_v23 = vmul.f32 %v365_v21, %v1025_v3  ;;  %v372_v24 = vmul.f32 %v371_v22, %v1033_v30  ;;  %v373_v25 = vmul.f32 %v371_v22, %v1035_v31  ;;  %s1153_s12 = sld [smem:[#allocation8 + $0x3]] }
  0x7e   :  { %v356_v28 = vadd.f32 %v354_v12, %v350_v1  ;;  %v357_v29 = vadd.f32 %v355_v13, %v351_v20  ;;  %v380_v34 = vstv %s1095_s24  ;;  %v383_v35 = vstv %s1091_s5  ;;  %s1157_s13 = sld [smem:[#allocation7 + $0x1f]] }
  0x7f   :  { %v381_v36 = vmul.f32 %v380_v34, %v879_v26  ;;  %v382_v37 = vmul.f32 %v380_v34, %v881_v27  ;;  %v387_v40 = vstv %s1099_s25  ;;  %v393_v41 = vstv %s1103_s26  ;;  %s1161_s0 = sld [smem:[#allocation7 + $0x20]] }
  0x80   :  { %v362_v42 = vadd.f32 %v360_v17, %v356_v28  ;;  %v363_v43 = vadd.f32 %v361_v0, %v357_v29  ;;  %v388_v44 = vmul.f32 %v387_v40, %v895_v38  ;;  %v389_v45 = vmul.f32 %v387_v40, %v897_v39  ;;  %s1168_s14 = sld [smem:[#allocation7 + $0x21]] }
  0x81   :  { %v384_v48 = vadd.f32 %v383_v35, %v381_v36  ;;  %v385_v49 = vadd.f32 %v383_v35, %v382_v37  ;;  %v394_v52 = vmul.f32 %v393_v41, %v913_v50  ;;  %v395_v53 = vmul.f32 %v393_v41, %v915_v51  ;;  %s1179_s15 = sld [smem:[#allocation7 + $0x22]] }
  0x82   :  { %v368_v54 = vadd.f32 %v366_v15, %v362_v42  ;;  %v369_v55 = vadd.f32 %v367_v23, %v363_v43  ;;  %v399_v56 = vstv %s1111_s27  ;;  %v405_v57 = vstv %s1118_s30  ;;  %s1185_s16 = sld [smem:[#allocation7 + $0x23]] }
  0x83   :  { %v390_v58 = vadd.f32 %v388_v44, %v384_v48  ;;  %v391_v59 = vadd.f32 %v389_v45, %v385_v49  ;;  %v400_v62 = vmul.f32 %v399_v56, %v933_v6  ;;  %v401_v63 = vmul.f32 %v399_v56, %v935_v7  ;;  %s1193_s17 = sld [smem:[#allocation7 + $0x24]] }
  0x84   :  { %v313_v5 = vmax.f32 %v1120_v14, 0.0  ;;  %v1164_v10 = vadd.f32 %v372_v24, %v368_v54  ;;  %v406_v9 = vmul.f32 %v405_v57, %v949_v18  ;;  %v407_v11 = vmul.f32 %v405_v57, %v951_v19  ;;  %s1197_s1 = sld [smem:[#allocation7 + $0x25]] }
  0x85   :  { %v396_v12 = vadd.f32 %v394_v52, %v390_v58  ;;  %v397_v13 = vadd.f32 %v395_v53, %v391_v59  ;;  %v411_v17 = vstv %s1125_s8  ;;  %v417_v0 = vstv %s1129_s9  ;;  %s1203_s3 = sld [smem:[#allocation7 + $0x26]] }
  0x86   :  { %v1172_v1 = vadd.f32 %v373_v25, %v369_v55  ;;  %v376_v20 = vmax.f32 %v1164_v10, 0.0  ;;  %v412_v21 = vmul.f32 %v411_v17, %v965_v32  ;;  %v413_v22 = vmul.f32 %v411_v17, %v967_v33  ;;  %s1205_s18 = sld [smem:[#allocation7 + $0x27]] }
  0x87   :  { %v402_v15 = vadd.f32 %v400_v62, %v396_v12  ;;  %v403_v23 = vadd.f32 %v401_v63, %v397_v13  ;;  %v418_v24 = vmul.f32 %v417_v0, %v981_v46  ;;  %v419_v28 = vmul.f32 %v417_v0, %v983_v47  ;;  %s1211_s19 = sld [smem:[#allocation8 + $0x4]] }
  0x88   :  { %v423_v29 = vstv %s1135_s2  ;;  %v429_v34 = vstv %s1139_s4  ;;  %v435_v35 = vstv %s1145_s10  ;;  %v444_v36 = vstv %s1149_s11  ;;  %s1215_s20 = sld [smem:[#allocation7 + $0x28]] }
  0x89   :  { %v408_v25 = vadd.f32 %v406_v9, %v402_v15  ;;  %v409_v37 = vadd.f32 %v407_v11, %v403_v23  ;;  %v424_v40 = vmul.f32 %v423_v29, %v997_v60  ;;  %v425_v41 = vmul.f32 %v423_v29, %v999_v61  ;;  %s1219_s21 = sld [smem:[#allocation7 + $0x29]] }
  0x8a   :  { %v430_v42 = vmul.f32 %v429_v34, %v1023_v2  ;;  %v431_v43 = vmul.f32 %v429_v34, %v1025_v3  ;;  %v436_v44 = vmul.f32 %v435_v35, %v1033_v30  ;;  %v437_v45 = vmul.f32 %v435_v35, %v1035_v31  ;;  %s1223_s22 = sld [smem:[#allocation7 + $0x2a]] }
  0x8b   :  { %v414_v48 = vadd.f32 %v412_v21, %v408_v25  ;;  %v415_v49 = vadd.f32 %v413_v22, %v409_v37  ;;  %v445_v52 = vmul.f32 %v444_v36, %v879_v26  ;;  %v446_v53 = vmul.f32 %v444_v36, %v881_v27  ;;  %s1232_s23 = sld [smem:[#allocation7 + $0x2b]] }
  0x8c   :  { %v447_v54 = vstv %s1153_s12  ;;  %v451_v55 = vstv %s1157_s13  ;;  %v457_v56 = vstv %s1161_s0  ;;  %v463_v57 = vstv %s1168_s14  ;;  %s1237_s5 = sld [smem:[#allocation7 + $0x2c]] }
  0x8d   :  { %v420_v58 = vadd.f32 %v418_v24, %v414_v48  ;;  %v421_v59 = vadd.f32 %v419_v28, %v415_v49  ;;  %v448_v62 = vadd.f32 %v447_v54, %v445_v52  ;;  %v449_v63 = vadd.f32 %v447_v54, %v446_v53  ;;  %s1245_s24 = sld [smem:[#allocation7 + $0x2d]] }
  0x8e   :  { %v452_v9 = vmul.f32 %v451_v55, %v895_v38  ;;  %v453_v11 = vmul.f32 %v451_v55, %v897_v39  ;;  %v458_v12 = vmul.f32 %v457_v56, %v913_v50  ;;  %v459_v13 = vmul.f32 %v457_v56, %v915_v51  ;;  %s1251_s25 = sld [smem:[#allocation7 + $0x2e]] }
  0x8f   :  { %v426_v17 = vadd.f32 %v424_v40, %v420_v58  ;;  %v427_v0 = vadd.f32 %v425_v41, %v421_v59  ;;  %v464_v21 = vmul.f32 %v463_v57, %v933_v6  ;;  %v465_v22 = vmul.f32 %v463_v57, %v935_v7  ;;  %s1259_s26 = sld [smem:[#allocation7 + $0x2f]] }
  0x90   :  { %v454_v15 = vadd.f32 %v452_v9, %v448_v62  ;;  %v455_v23 = vadd.f32 %v453_v11, %v449_v63  ;;  %v469_v24 = vstv %s1179_s15  ;;  %v475_v28 = vstv %s1185_s16  ;;  %s1263_s27 = sld [smem:[#allocation7 + $0x30]] }
  0x91   :  { %v377_v29 = vmax.f32 %v1172_v1, 0.0  ;;  %v432_v34 = vadd.f32 %v430_v42, %v426_v17  ;;  %v433_v35 = vadd.f32 %v431_v43, %v427_v0  ;;  %v470_v36 = vmul.f32 %v469_v24, %v949_v18  ;;  %s1267_s28 = sld [smem:[#allocation7 + $0x31]] }
  0x92   :  { %v460_v25 = vadd.f32 %v458_v12, %v454_v15  ;;  %v461_v37 = vadd.f32 %v459_v13, %v455_v23  ;;  %v471_v40 = vmul.f32 %v469_v24, %v951_v19  ;;  %v476_v41 = vmul.f32 %v475_v28, %v965_v32  ;;  %s1271_s29 = sld [smem:[#allocation10]] }
  0x93   :  { %v1227_v48 = vadd.f32 %v436_v44, %v432_v34  ;;  %v477_v49 = vmul.f32 %v475_v28, %v967_v33  ;;  %v481_v52 = vstv %s1193_s17  ;;  %v487_v53 = vstv %s1197_s1  ;;  %s1275_s30 = sld [smem:[#allocation10 + $0x1]] }
  0x94   :  { %v1234_v42 = vadd.f32 %v437_v45, %v433_v35  ;;  %v466_v43 = vadd.f32 %v464_v21, %v460_v25  ;;  %v467_v54 = vadd.f32 %v465_v22, %v461_v37  ;;  %v482_v55 = vmul.f32 %v481_v52, %v981_v46  ;;  %s1279_s8 = sld [smem:[#allocation10 + $0x2]] }
  0x95   :  { %v440_v56 = vmax.f32 %v1227_v48, 0.0  ;;  %v483_v44 = vmul.f32 %v481_v52, %v983_v47  ;;  %v488_v57 = vmul.f32 %v487_v53, %v997_v60  ;;  %v489_v58 = vmul.f32 %v487_v53, %v999_v61  ;;  %s1287_s9 = sld [smem:[#allocation10 + $0x3]] }
  0x96   :  { %v472_v59 = vadd.f32 %v470_v36, %v466_v43  ;;  %v473_v45 = vadd.f32 %v471_v40, %v467_v54  ;;  %v493_v62 = vstv %s1203_s3  ;;  %v499_v63 = vstv %s1205_s18  ;;  %s699_s2 = sld [smem:[#allocation10 + $0x4]] }
  0x97   :  { %v494_v9 = vmul.f32 %v493_v62, %v1023_v2  ;;  %v495_v11 = vmul.f32 %v493_v62, %v1025_v3  ;;  %v500_v12 = vmul.f32 %v499_v63, %v1033_v30  ;;  %v501_v13 = vmul.f32 %v499_v63, %v1035_v31 }
  0x98   :  { %v478_v17 = vadd.f32 %v476_v41, %v472_v59  ;;  %v479_v0 = vadd.f32 %v477_v49, %v473_v45  ;;  %v508_v21 = vstv %s1215_s20  ;;  %v511_v22 = vstv %s1211_s19 }
  0x99   :  { %v509_v15 = vmul.f32 %v508_v21, %v879_v26  ;;  %v510_v23 = vmul.f32 %v508_v21, %v881_v27  ;;  %v515_v24 = vstv %s1219_s21  ;;  %v521_v28 = vstv %s1223_s22 }
  0x9a   :  { %v484_v34 = vadd.f32 %v482_v55, %v478_v17  ;;  %v485_v35 = vadd.f32 %v483_v44, %v479_v0  ;;  %v516_v36 = vmul.f32 %v515_v24, %v895_v38  ;;  %v517_v25 = vmul.f32 %v515_v24, %v897_v39 }
  0x9b   :  { %v512_v37 = vadd.f32 %v511_v22, %v509_v15  ;;  %v513_v40 = vadd.f32 %v511_v22, %v510_v23  ;;  %v522_v26 = vmul.f32 %v521_v28, %v913_v50  ;;  %v523_v27 = vmul.f32 %v521_v28, %v915_v51 }
  0x9c   :  { %v490_v41 = vadd.f32 %v488_v57, %v484_v34  ;;  %v491_v49 = vadd.f32 %v489_v58, %v485_v35  ;;  %v527_v52 = vstv %s1232_s23  ;;  %v533_v53 = vstv %s1237_s5 }
  0x9d   :  { %v518_v38 = vadd.f32 %v516_v36, %v512_v37  ;;  %v519_v39 = vadd.f32 %v517_v25, %v513_v40  ;;  %v528_v43 = vmul.f32 %v527_v52, %v933_v6  ;;  %v529_v54 = vmul.f32 %v527_v52, %v935_v7 }
  0x9e   :  { %v496_v50 = vadd.f32 %v494_v9, %v490_v41  ;;  %v497_v51 = vadd.f32 %v495_v11, %v491_v49  ;;  %v534_v55 = vmul.f32 %v533_v53, %v949_v18  ;;  %v535_v44 = vmul.f32 %v533_v53, %v951_v19 }
  0x9f   :  { %v524_v57 = vadd.f32 %v522_v26, %v518_v38  ;;  %v525_v58 = vadd.f32 %v523_v27, %v519_v39  ;;  %v539_v59 = vstv %s1245_s24  ;;  %v545_v45 = vstv %s1251_s25 }
  0xa0   :  { %v441_v6 = vmax.f32 %v1234_v42, 0.0  ;;  %v502_v62 = vadd.f32 %v500_v12, %v496_v50  ;;  %v503_v7 = vadd.f32 %v501_v13, %v497_v51  ;;  %v540_v63 = vmul.f32 %v539_v59, %v965_v32 }
  0xa1   :  { %v530_v9 = vadd.f32 %v528_v43, %v524_v57  ;;  %v531_v18 = vadd.f32 %v529_v54, %v525_v58  ;;  %v541_v19 = vmul.f32 %v539_v59, %v967_v33  ;;  %v546_v11 = vmul.f32 %v545_v45, %v981_v46 }
  0xa2   :  { %v504_v17 = vmax.f32 %v502_v62, 0.0  ;;  %v547_v0 = vmul.f32 %v545_v45, %v983_v47  ;;  %v551_v21 = vstv %s1259_s26  ;;  %v557_v42 = vstv %s1263_s27 }
  0xa3   :  { %v505_v12 = vmax.f32 %v503_v7, 0.0  ;;  %v536_v13 = vadd.f32 %v534_v55, %v530_v9  ;;  %v537_v32 = vadd.f32 %v535_v44, %v531_v18  ;;  %v552_v22 = vmul.f32 %v551_v21, %v997_v60 }
  0xa4   :  { %v553_v15 = vmul.f32 %v551_v21, %v999_v61  ;;  %v558_v33 = vmul.f32 %v557_v42, %v1023_v2  ;;  %v563_v23 = vstv %s1267_s28  ;;  %v572_v46 = vstv %s1271_s29 }
  0xa5   :  { %v542_v24 = vadd.f32 %v540_v63, %v536_v13  ;;  %v543_v28 = vadd.f32 %v541_v19, %v537_v32  ;;  %v559_v34 = vmul.f32 %v557_v42, %v1025_v3  ;;  %v564_v47 = vmul.f32 %v563_v23, %v1033_v30 }
  0xa6   :  { %v573_v35 = vmul.f32 %v572_v46, %v312_v16  ;;  %v574_v36 = vmul.f32 %v572_v46, %v313_v5  ;;  %v579_v60 = vstv %s1275_s30  ;;  %v585_v25 = vstv %s1279_s8 }
  0xa7   :  { %v548_v61 = vadd.f32 %v546_v11, %v542_v24  ;;  %v549_v2 = vadd.f32 %v547_v0, %v543_v28  ;;  %v580_v37 = vmul.f32 %v579_v60, %v376_v20  ;;  %v581_v3 = vmul.f32 %v579_v60, %v377_v29 }
  0xa8   :  { %v576_v30 = vadd.f32 %v575_v8, %v573_v35  ;;  %v577_v4 = vadd.f32 %v575_v8, %v574_v36  ;;  %v586_v14 = vmul.f32 %v585_v25, %v440_v56  ;;  %v587_v16 = vmul.f32 %v585_v25, %v441_v6 }
  0xa9   :  { %v554_v5 = vadd.f32 %v552_v22, %v548_v61  ;;  %v555_v10 = vadd.f32 %v553_v15, %v549_v2  ;;  %v565_v20 = vmul.f32 %v563_v23, %v1035_v31  ;;  %v591_v1 = vstv %s1287_s9 }
  0xaa   :  { %v582_v29 = vadd.f32 %v580_v37, %v576_v30  ;;  %v583_v40 = vadd.f32 %v581_v3, %v577_v4  ;;  %v592_v41 = vmul.f32 %v591_v1, %v504_v17  ;;  %v593_v49 = vmul.f32 %v591_v1, %v505_v12 }
  0xab   :  { %v560_v26 = vadd.f32 %v558_v33, %v554_v5  ;;  %v561_v27 = vadd.f32 %v559_v34, %v555_v10  ;;  %v597_v8 = vstv %s699_s2 }
  0xac   :  { %v588_v52 = vadd.f32 %v586_v14, %v582_v29  ;;  %v589_v53 = vadd.f32 %v587_v16, %v583_v40 }
  0xad   :  { %v566_v38 = vadd.f32 %v564_v47, %v560_v26  ;;  %v567_v39 = vadd.f32 %v565_v20, %v561_v27 }
  0xae   :  { %v594_v56 = vadd.f32 %v592_v41, %v588_v52  ;;  %v595_v54 = vadd.f32 %v593_v49, %v589_v53 }
  0xaf   :  { %v568_v43 = vmax.f32 %v566_v38, 0.0  ;;  %v569_v48 = vmax.f32 %v567_v39, 0.0 }
  0xb1   :  { %v598_v50 = vmul.f32 %v597_v8, %v568_v43  ;;  %v599_v51 = vmul.f32 %v597_v8, %v569_v48 }
  0xb3   :  { %v600_v55 = vadd.f32 %v598_v50, %v594_v56  ;;  %v601_v31 = vadd.f32 %v599_v51, %v595_v54 }
  0xb5   :  { %v700_v44 = vclamps-f32 %v600_v55, 1.0  ;;  %v701_v57 = vclamps-f32 %v601_v31, 1.0 }
  0xb7   :  { %606 = vst [vmem:[%s1334_s7] sm:$0xff] %v700_v44  ;;  %607 = vst [vmem:[%s1334_s7 + $0x8] sm:$0xff] %v701_v57 }
  0xb8   :  { %612 = vsyncpa [#allocation4], 1 }
  0xb9   :  { %613 = vsyncpa [#allocation6], 1 }
  0xba   :  { %614 = vsyncpa [#allocation9], 1 }

</bundles_post_ra>
